<compile_context>
chip_gen: v7x
topology: tpu7x:2x2x1
jax: 0.10.0
libtpu: 0.0.40
codegen_flags: <defaults>
</compile_context>

<pallas_src>
import functools
import math

import jax
import jax.numpy as jnp
from jax.experimental import pallas as pl
from jax.experimental.pallas import tpu as pltpu  # noqa: F401  (TPU backend)

MATMUL_DTYPE = jnp.bfloat16     # MXU operand dtype (accumulation is float32)


# ---------------------------------------------------------------- helpers ---
def _layernorm(x, w, b, eps=1e-5):
    mu = jnp.mean(x, axis=-1, keepdims=True)
    xc = x - mu
    var = jnp.mean(xc * xc, axis=-1, keepdims=True)
    return xc * jax.lax.rsqrt(var + eps) * w + b


def _gelu_exact(x):
    # PyTorch nn.GELU() default: 0.5 * x * (1 + erf(x / sqrt(2)))
    # TODO(synk): tanh-approx GELU would move the erf polynomial off the VPU
    # onto the EUP, but changes numerics vs. the PyTorch default -> kept exact.
    return 0.5 * x * (1.0 + jax.lax.erf(x * 0.7071067811865476))


# ----------------------------------------------------------------- kernel ---
def encoder_block_kernel(x_ref, mask_ref,
                         ln1_w_ref, ln1_b_ref,
                         wqkv_ref, proj_w_ref, proj_b_ref,
                         ln2_w_ref, ln2_b_ref,
                         fc1_w_ref, fc1_b_ref, fc2_w_ref, fc2_b_ref,
                         o_ref, *, num_heads):
    """Fused EncoderBlock forward for the whole (tiny) batch, all-VMEM."""
    B, N, C = x_ref.shape
    H = num_heads
    BN = B * N
    cdt = wqkv_ref.dtype                          # matmul operand dtype

    x = x_ref[...].reshape(BN, C)                 # leading-dim reshape, layout-safe

    # ---- attention branch:  x + proj(MHA(norm_att(x))) ----
    xn = _layernorm(x, ln1_w_ref[...], ln1_b_ref[...])
    qkv = jnp.dot(xn.astype(cdt), wqkv_ref[...],
                  preferred_element_type=jnp.float32)           # (BN, 3C) f32
    q3 = qkv[:, 0 * C:1 * C].reshape(B, N, C)     # scale folded into Q weights
    k3 = qkv[:, 1 * C:2 * C].reshape(B, N, C)
    v3 = qkv[:, 2 * C:3 * C].reshape(B, N, C)

    # Block-diagonal-head trick: row j = h*N + n of q_bd holds query n with all
    # feature columns outside head h zeroed, so ONE batched contraction over
    # the full C produces every head's scores.  bd_mask is precomputed host-side.
    bd_mask = mask_ref[...]                                     # (H*N, C) f32
    q_bd = (q3[:, None, :, :] * bd_mask.reshape(1, H, N, C)).reshape(B, H * N, C)

    # Transposed score layout: keys on sublanes, H*N queries dense on lanes
    # -> (B, 8, 64) ~ one vreg per batch element instead of eight.
    s = jnp.einsum('bmc,bjc->bmj', k3.astype(cdt), q_bd.astype(cdt),
                   preferred_element_type=jnp.float32)          # (B, N, H*N)
    s = s - jnp.max(s, axis=-2, keepdims=True)                  # softmax over keys
    e = jnp.exp(s)
    inv_l = pl.reciprocal(jnp.sum(e, axis=-2, keepdims=True), approx=True)
    p = e * inv_l                                               # (B, N, H*N) f32

    o_full = jnp.einsum('bmj,bmc->bjc', p.astype(cdt), v3.astype(cdt),
                        preferred_element_type=jnp.float32)     # (B, H*N, C)
    # Head collapse: zero the off-head columns and sum the H tile-aligned
    # block-rows (reshape+sum replaces the old 8-way concat / 7-add loop).
    attn = (o_full * bd_mask).reshape(B, H, N, C).sum(axis=1).reshape(BN, C)

    attn = jnp.dot(attn.astype(cdt), proj_w_ref[...],
                   preferred_element_type=jnp.float32) + proj_b_ref[...]
    x1 = x + attn

    # ---- MLP branch:  x1 + fc2(gelu(fc1(norm2(x1)))) ----
    xn2 = _layernorm(x1, ln2_w_ref[...], ln2_b_ref[...])
    h1 = jnp.dot(xn2.astype(cdt), fc1_w_ref[...],
                 preferred_element_type=jnp.float32) + fc1_b_ref[...]
    h1 = _gelu_exact(h1)
    h2 = jnp.dot(h1.astype(cdt), fc2_w_ref[...],
                 preferred_element_type=jnp.float32) + fc2_b_ref[...]

    o_ref[...] = (x1 + h2).reshape(B, N, C)


# ------------------------------------------------------------- wrappers ----
def encoder_block_pallas(v, params, *, num_heads):
    B, N, C = v.shape
    BN, H = B * N, num_heads
    mlp_hidden = params["fc1_w"].shape[1]

    args = (v, params["bd_mask"],
            params["ln1_w"], params["ln1_b"],
            params["wqkv"], params["proj_w"], params["proj_b"],
            params["ln2_w"], params["ln2_b"],
            params["fc1_w"], params["fc1_b"],
            params["fc2_w"], params["fc2_b"])

    flops = (2 * BN * C * 3 * C                    # fused QKV matmul
             + 2 * 2 * B * N * (H * N) * C         # scores + PV (block-diag trick)
             + 2 * BN * C * C                      # proj
             + 4 * BN * C * mlp_hidden)            # fc1 + fc2
    transcendentals = B * N * H * N + BN * mlp_hidden + 2 * BN + B * H * N
    bytes_accessed = int(sum(int(a.size) * a.dtype.itemsize for a in args)
                         + BN * C * 4)

    kernel = functools.partial(encoder_block_kernel, num_heads=num_heads)
    # No grid: the whole problem (~60 KB) lives in VMEM for a single invocation.
    # TODO(synk): for production batch sizes, add a batch grid axis with
    # dimension_semantics=("parallel",) and >=64-row blocks, re-tiling against
    # v7x's 64 MiB VMEM.
    return pl.pallas_call(
        kernel,
        out_shape=jax.ShapeDtypeStruct((B, N, C), jnp.float32),
        cost_estimate=pl.CostEstimate(flops=int(flops),
                                      transcendentals=int(transcendentals),
                                      bytes_accessed=bytes_accessed),
    )(*args)


@functools.partial(jax.jit, static_argnums=(2,))
def encoder_block_forward(v, params, num_heads):
    return encoder_block_pallas(v, params, num_heads=num_heads)


# -------------------------------------------------------- parameter init ---
def init_params(key, dim, num_heads, seq_len, mlp_ratio=4.0,
                matmul_dtype=MATMUL_DTYPE):
    mlp_hidden = int(dim * mlp_ratio)
    head_dim = dim // num_heads
    scale = head_dim ** (-0.5)                   # qk_scale=None default
    k = jax.random.split(key, 7)

    def lin_w(kk, fan_in, fan_out):              # PyTorch nn.Linear default init
        bound = 1.0 / math.sqrt(fan_in)
        return jax.random.uniform(kk, (fan_out, fan_in), jnp.float32,
                                  -bound, bound)

    def lin_b(kk, fan_in, fan_out):
        bound = 1.0 / math.sqrt(fan_in)
        return jax.random.uniform(kk, (fan_out,), jnp.float32, -bound, bound)

    qkv_w = lin_w(k[0], dim, 3 * dim)            # (3*dim, dim), rows = [q|k|v]
    proj_w = lin_w(k[1], dim, dim)
    proj_b = lin_b(k[2], dim, dim)
    fc1_w = lin_w(k[3], dim, mlp_hidden)
    fc1_b = lin_b(k[4], dim, mlp_hidden)
    fc2_w = lin_w(k[5], mlp_hidden, dim)
    fc2_b = lin_b(k[6], mlp_hidden, dim)

    # x @ wqkv layout; attention scale folded into the Q columns (host-side).
    wqkv = qkv_w.T                               # (dim, 3*dim), cols = [q|k|v]
    wqkv = wqkv.at[:, :dim].multiply(scale)

    # Block-diagonal head mask: row j = h*seq_len + n is 1 on head-h columns.
    col_head = jnp.arange(dim)[None, :] // head_dim
    row_head = jnp.arange(num_heads * seq_len)[:, None] // seq_len
    bd_mask = (col_head == row_head).astype(jnp.float32)        # (H*N, dim)

    # TODO(synk): pos_embedding, Crossattn, cls_token, norm_mlp are created in
    # EncoderBlock.__init__ but never used in forward -> intentionally omitted.
    return dict(
        bd_mask=bd_mask,
        ln1_w=jnp.ones((1, dim), jnp.float32),    # norm_att (PyTorch LN defaults)
        ln1_b=jnp.zeros((1, dim), jnp.float32),
        wqkv=wqkv.astype(matmul_dtype),
        proj_w=proj_w.T.astype(matmul_dtype),
        proj_b=proj_b.reshape(1, -1),
        ln2_w=jnp.ones((1, dim), jnp.float32),    # norm2
        ln2_b=jnp.zeros((1, dim), jnp.float32),
        fc1_w=fc1_w.T.astype(matmul_dtype),
        fc1_b=fc1_b.reshape(1, -1),
        fc2_w=fc2_w.T.astype(matmul_dtype),
        fc2_b=fc2_b.reshape(1, -1),
    )


# ---------------------------------------------------------- f32 reference ---
def encoder_block_reference(v, params, num_heads):
    """Pure-JAX reference matching the PyTorch EncoderBlock forward."""
    B, N, C = v.shape
    H = num_heads
    hd = C // H
    f32 = lambda a: a.astype(jnp.float32)

    def ln(x, w, b, eps=1e-5):
        mu = x.mean(-1, keepdims=True)
        xc = x - mu
        var = (xc * xc).mean(-1, keepdims=True)
        return xc / jnp.sqrt(var + eps) * w + b

    xn = ln(v, params["ln1_w"], params["ln1_b"])
    qkv = xn @ f32(params["wqkv"])                        # scale folded into Q
    q, k, vv = qkv[..., :C], qkv[..., C:2 * C], qkv[..., 2 * C:]
    q = q.reshape(B, N, H, hd).transpose(0, 2, 1, 3)
    k = k.reshape(B, N, H, hd).transpose(0, 2, 1, 3)
    vv = vv.reshape(B, N, H, hd).transpose(0, 2, 1, 3)
    s = jnp.einsum('bhnd,bhmd->bhnm', q, k)
    p = jax.nn.softmax(s, axis=-1)
    o = jnp.einsum('bhnm,bhmd->bhnd', p, vv)
    o = o.transpose(0, 2, 1, 3).reshape(B, N, C)
    attn = o @ f32(params["proj_w"]) + params["proj_b"]
    x1 = v + attn
    xn2 = ln(x1, params["ln2_w"], params["ln2_b"])
    h1 = xn2 @ f32(params["fc1_w"]) + params["fc1_b"]
    h1 = 0.5 * h1 * (1.0 + jax.lax.erf(h1 * 0.7071067811865476))
    h2 = h1 @ f32(params["fc2_w"]) + params["fc2_b"]
    return x1 + h2


# ------------------------------------------------------------------ main ---
if __name__ == "__main__":
    key = jax.random.PRNGKey(0)
    B, N, dim, num_heads = 2, 8, 32, 8        # batch, seq, channels, heads
    k_in, k_par = jax.random.split(key)
    v = jax.random.normal(k_in, (B, N, dim), jnp.float32)
    params = init_params(k_par, dim, num_heads, N)

    out = encoder_block_forward(v, params, num_heads)
    out = jax.block_until_ready(out)
    assert out.shape == (B, N, dim), out.shape
    assert bool(jnp.all(jnp.isfinite(out)))

    # Sanity check vs. a pure-JAX reference (bf16 matmul operands and the
    # approximate reciprocal introduce small, bounded deviations).
    ref = encoder_block_reference(v, params, num_heads)
    max_err = float(jnp.max(jnp.abs(out - ref)))
    assert max_err < 1e-1, f"max abs error vs reference: {max_err}"
    print("KERNEL_OK")
</pallas_src>

<mosaic_0001>
module attributes {stable_mosaic.version = 11 : i64} {
  func.func @encoder_block_kernel(%arg0: memref<2x8x32xf32, #tpu.memory_space<vmem>>, %arg1: memref<64x32xf32, #tpu.memory_space<vmem>>, %arg2: memref<1x32xf32, #tpu.memory_space<vmem>>, %arg3: memref<1x32xf32, #tpu.memory_space<vmem>>, %arg4: memref<32x96xbf16, #tpu.memory_space<vmem>>, %arg5: memref<32x32xbf16, #tpu.memory_space<vmem>>, %arg6: memref<1x32xf32, #tpu.memory_space<vmem>>, %arg7: memref<1x32xf32, #tpu.memory_space<vmem>>, %arg8: memref<1x32xf32, #tpu.memory_space<vmem>>, %arg9: memref<32x128xbf16, #tpu.memory_space<vmem>>, %arg10: memref<1x128xf32, #tpu.memory_space<vmem>>, %arg11: memref<128x32xbf16, #tpu.memory_space<vmem>>, %arg12: memref<1x32xf32, #tpu.memory_space<vmem>>, %arg13: memref<2x8x32xf32, #tpu.memory_space<vmem>>) attributes {dimension_semantics = [], scalar_prefetch = 0 : i64, scratch_operands = 0 : i64, tpu.core_type = #tpu.core_type<tc>} {
    %c0 = arith.constant 0 : index
    %c0_0 = arith.constant 0 : index
    %c0_1 = arith.constant 0 : index
    %0 = vector.load %arg0[%c0, %c0_0, %c0_1] : memref<2x8x32xf32, #tpu.memory_space<vmem>>, vector<2x8x32xf32>
    %1 = vector.shape_cast %0 : vector<2x8x32xf32> to vector<16x32xf32>
    %c0_2 = arith.constant 0 : index
    %c0_3 = arith.constant 0 : index
    %2 = vector.load %arg2[%c0_2, %c0_3] : memref<1x32xf32, #tpu.memory_space<vmem>>, vector<1x32xf32>
    %c0_4 = arith.constant 0 : index
    %c0_5 = arith.constant 0 : index
    %3 = vector.load %arg3[%c0_4, %c0_5] : memref<1x32xf32, #tpu.memory_space<vmem>>, vector<1x32xf32>
    %cst = arith.constant dense<0.000000e+00> : vector<16xf32>
    %4 = vector.multi_reduction <add>, %1, %cst [1] : vector<16x32xf32> to vector<16xf32>
    %5 = vector.shape_cast %4 : vector<16xf32> to vector<16x1xf32>
    %cst_6 = arith.constant 3.200000e+01 : f32
    %6 = vector.broadcast %cst_6 : f32 to vector<16x1xf32>
    %7 = arith.divf %5, %6 : vector<16x1xf32>
    %8 = vector.broadcast %7 : vector<16x1xf32> to vector<16x32xf32>
    %9 = arith.subf %1, %8 : vector<16x32xf32>
    %10 = arith.mulf %9, %9 : vector<16x32xf32>
    %cst_7 = arith.constant dense<0.000000e+00> : vector<16xf32>
    %11 = vector.multi_reduction <add>, %10, %cst_7 [1] : vector<16x32xf32> to vector<16xf32>
    %12 = vector.shape_cast %11 : vector<16xf32> to vector<16x1xf32>
    %cst_8 = arith.constant 3.200000e+01 : f32
    %13 = vector.broadcast %cst_8 : f32 to vector<16x1xf32>
    %14 = arith.divf %12, %13 : vector<16x1xf32>
    %cst_9 = arith.constant 9.99999974E-6 : f32
    %15 = vector.broadcast %cst_9 : f32 to vector<16x1xf32>
    %16 = arith.addf %14, %15 : vector<16x1xf32>
    %17 = math.rsqrt %16 : vector<16x1xf32>
    %18 = vector.broadcast %17 : vector<16x1xf32> to vector<16x32xf32>
    %19 = arith.mulf %9, %18 : vector<16x32xf32>
    %20 = vector.broadcast %2 : vector<1x32xf32> to vector<16x32xf32>
    %21 = arith.mulf %19, %20 : vector<16x32xf32>
    %22 = vector.broadcast %3 : vector<1x32xf32> to vector<16x32xf32>
    %23 = arith.addf %21, %22 : vector<16x32xf32>
    %24 = arith.truncf %23 : vector<16x32xf32> to vector<16x32xbf16>
    %c0_10 = arith.constant 0 : index
    %c0_11 = arith.constant 0 : index
    %25 = vector.load %arg4[%c0_10, %c0_11] : memref<32x96xbf16, #tpu.memory_space<vmem>>, vector<32x96xbf16>
    %cst_12 = arith.constant dense<0.000000e+00> : vector<16x96xf32>
    %26 = tpu.matmul %24, %25, %cst_12 {dimension_numbers = #tpu.dot_dimension_numbers<[1], [0], [0], [1], [0, 0, 1, 1], [], []>} : vector<16x32xbf16>, vector<32x96xbf16>, vector<16x96xf32> -> vector<16x96xf32>
    %27 = vector.extract_strided_slice %26 {offsets = [0, 0], sizes = [16, 32], strides = [1, 1]} : vector<16x96xf32> to vector<16x32xf32>
    %28 = vector.shape_cast %27 : vector<16x32xf32> to vector<2x8x32xf32>
    %29 = vector.extract_strided_slice %26 {offsets = [0, 32], sizes = [16, 32], strides = [1, 1]} : vector<16x96xf32> to vector<16x32xf32>
    %30 = vector.shape_cast %29 : vector<16x32xf32> to vector<2x8x32xf32>
    %31 = vector.extract_strided_slice %26 {offsets = [0, 64], sizes = [16, 32], strides = [1, 1]} : vector<16x96xf32> to vector<16x32xf32>
    %32 = vector.shape_cast %31 : vector<16x32xf32> to vector<2x8x32xf32>
    %c0_13 = arith.constant 0 : index
    %c0_14 = arith.constant 0 : index
    %33 = vector.load %arg1[%c0_13, %c0_14] : memref<64x32xf32, #tpu.memory_space<vmem>>, vector<64x32xf32>
    %34 = vector.shape_cast %28 : vector<2x8x32xf32> to vector<2x1x8x32xf32>
    %35 = vector.shape_cast %33 : vector<64x32xf32> to vector<1x8x8x32xf32>
    %36 = vector.broadcast %34 : vector<2x1x8x32xf32> to vector<2x8x8x32xf32>
    %37 = vector.broadcast %35 : vector<1x8x8x32xf32> to vector<2x8x8x32xf32>
    %38 = arith.mulf %36, %37 : vector<2x8x8x32xf32>
    %39 = vector.shape_cast %38 : vector<2x8x8x32xf32> to vector<2x64x32xf32>
    %40 = arith.truncf %30 : vector<2x8x32xf32> to vector<2x8x32xbf16>
    %41 = arith.truncf %39 : vector<2x64x32xf32> to vector<2x64x32xbf16>
    "tpu.trace_start"() <{level = 10 : i32, message = "bmc,bjc->bmj"}> : () -> ()
    %cst_15 = arith.constant dense<0.000000e+00> : vector<2x8x64xf32>
    %42 = tpu.matmul %40, %41, %cst_15 {dimension_numbers = #tpu.dot_dimension_numbers<[2], [2], [1], [1], [0, 0, 0, 1, 1, 1], [0], [0]>} : vector<2x8x32xbf16>, vector<2x64x32xbf16>, vector<2x8x64xf32> -> vector<2x8x64xf32>
    "tpu.trace_stop"() : () -> ()
    %cst_16 = arith.constant dense<0xFF800000> : vector<2x64xf32>
    %43 = vector.multi_reduction <maximumf>, %42, %cst_16 [1] : vector<2x8x64xf32> to vector<2x64xf32>
    %44 = vector.shape_cast %43 : vector<2x64xf32> to vector<2x1x64xf32>
    %45 = vector.broadcast %44 : vector<2x1x64xf32> to vector<2x8x64xf32>
    %46 = arith.subf %42, %45 : vector<2x8x64xf32>
    %47 = math.exp %46 : vector<2x8x64xf32>
    %cst_17 = arith.constant dense<0.000000e+00> : vector<2x64xf32>
    %48 = vector.multi_reduction <add>, %47, %cst_17 [1] : vector<2x8x64xf32> to vector<2x64xf32>
    %49 = vector.shape_cast %48 : vector<2x64xf32> to vector<2x1x64xf32>
    %50 = tpu.reciprocal %49 {approx = true} : vector<2x1x64xf32> -> vector<2x1x64xf32>
    %51 = vector.broadcast %50 : vector<2x1x64xf32> to vector<2x8x64xf32>
    %52 = arith.mulf %47, %51 : vector<2x8x64xf32>
    %53 = arith.truncf %52 : vector<2x8x64xf32> to vector<2x8x64xbf16>
    %54 = arith.truncf %32 : vector<2x8x32xf32> to vector<2x8x32xbf16>
    "tpu.trace_start"() <{level = 10 : i32, message = "bmj,bmc->bjc"}> : () -> ()
    %cst_18 = arith.constant dense<0.000000e+00> : vector<2x64x32xf32>
    %55 = tpu.matmul %53, %54, %cst_18 {dimension_numbers = #tpu.dot_dimension_numbers<[1], [1], [2], [2], [0, 0, 0, 2, 1, 2], [0], [0]>} : vector<2x8x64xbf16>, vector<2x8x32xbf16>, vector<2x64x32xf32> -> vector<2x64x32xf32>
    "tpu.trace_stop"() : () -> ()
    %56 = vector.shape_cast %33 : vector<64x32xf32> to vector<1x64x32xf32>
    %57 = vector.broadcast %56 : vector<1x64x32xf32> to vector<2x64x32xf32>
    %58 = arith.mulf %55, %57 : vector<2x64x32xf32>
    %59 = vector.shape_cast %58 : vector<2x64x32xf32> to vector<2x8x8x32xf32>
    %cst_19 = arith.constant dense<0.000000e+00> : vector<2x8x32xf32>
    %60 = vector.multi_reduction <add>, %59, %cst_19 [1] : vector<2x8x8x32xf32> to vector<2x8x32xf32>
    %61 = vector.shape_cast %60 : vector<2x8x32xf32> to vector<16x32xf32>
    %62 = arith.truncf %61 : vector<16x32xf32> to vector<16x32xbf16>
    %c0_20 = arith.constant 0 : index
    %c0_21 = arith.constant 0 : index
    %63 = vector.load %arg5[%c0_20, %c0_21] : memref<32x32xbf16, #tpu.memory_space<vmem>>, vector<32x32xbf16>
    %cst_22 = arith.constant dense<0.000000e+00> : vector<16x32xf32>
    %64 = tpu.matmul %62, %63, %cst_22 {dimension_numbers = #tpu.dot_dimension_numbers<[1], [0], [0], [1], [0, 0, 1, 1], [], []>} : vector<16x32xbf16>, vector<32x32xbf16>, vector<16x32xf32> -> vector<16x32xf32>
    %c0_23 = arith.constant 0 : index
    %c0_24 = arith.constant 0 : index
    %65 = vector.load %arg6[%c0_23, %c0_24] : memref<1x32xf32, #tpu.memory_space<vmem>>, vector<1x32xf32>
    %66 = vector.broadcast %65 : vector<1x32xf32> to vector<16x32xf32>
    %67 = arith.addf %64, %66 : vector<16x32xf32>
    %68 = arith.addf %1, %67 : vector<16x32xf32>
    %c0_25 = arith.constant 0 : index
    %c0_26 = arith.constant 0 : index
    %69 = vector.load %arg7[%c0_25, %c0_26] : memref<1x32xf32, #tpu.memory_space<vmem>>, vector<1x32xf32>
    %c0_27 = arith.constant 0 : index
    %c0_28 = arith.constant 0 : index
    %70 = vector.load %arg8[%c0_27, %c0_28] : memref<1x32xf32, #tpu.memory_space<vmem>>, vector<1x32xf32>
    %cst_29 = arith.constant dense<0.000000e+00> : vector<16xf32>
    %71 = vector.multi_reduction <add>, %68, %cst_29 [1] : vector<16x32xf32> to vector<16xf32>
    %72 = vector.shape_cast %71 : vector<16xf32> to vector<16x1xf32>
    %cst_30 = arith.constant 3.200000e+01 : f32
    %73 = vector.broadcast %cst_30 : f32 to vector<16x1xf32>
    %74 = arith.divf %72, %73 : vector<16x1xf32>
    %75 = vector.broadcast %74 : vector<16x1xf32> to vector<16x32xf32>
    %76 = arith.subf %68, %75 : vector<16x32xf32>
    %77 = arith.mulf %76, %76 : vector<16x32xf32>
    %cst_31 = arith.constant dense<0.000000e+00> : vector<16xf32>
    %78 = vector.multi_reduction <add>, %77, %cst_31 [1] : vector<16x32xf32> to vector<16xf32>
    %79 = vector.shape_cast %78 : vector<16xf32> to vector<16x1xf32>
    %cst_32 = arith.constant 3.200000e+01 : f32
    %80 = vector.broadcast %cst_32 : f32 to vector<16x1xf32>
    %81 = arith.divf %79, %80 : vector<16x1xf32>
    %cst_33 = arith.constant 9.99999974E-6 : f32
    %82 = vector.broadcast %cst_33 : f32 to vector<16x1xf32>
    %83 = arith.addf %81, %82 : vector<16x1xf32>
    %84 = math.rsqrt %83 : vector<16x1xf32>
    %85 = vector.broadcast %84 : vector<16x1xf32> to vector<16x32xf32>
    %86 = arith.mulf %76, %85 : vector<16x32xf32>
    %87 = vector.broadcast %69 : vector<1x32xf32> to vector<16x32xf32>
    %88 = arith.mulf %86, %87 : vector<16x32xf32>
    %89 = vector.broadcast %70 : vector<1x32xf32> to vector<16x32xf32>
    %90 = arith.addf %88, %89 : vector<16x32xf32>
    %91 = arith.truncf %90 : vector<16x32xf32> to vector<16x32xbf16>
    %c0_34 = arith.constant 0 : index
    %c0_35 = arith.constant 0 : index
    %92 = vector.load %arg9[%c0_34, %c0_35] : memref<32x128xbf16, #tpu.memory_space<vmem>>, vector<32x128xbf16>
    %cst_36 = arith.constant dense<0.000000e+00> : vector<16x128xf32>
    %93 = tpu.matmul %91, %92, %cst_36 {dimension_numbers = #tpu.dot_dimension_numbers<[1], [0], [0], [1], [0, 0, 1, 1], [], []>} : vector<16x32xbf16>, vector<32x128xbf16>, vector<16x128xf32> -> vector<16x128xf32>
    %c0_37 = arith.constant 0 : index
    %c0_38 = arith.constant 0 : index
    %94 = vector.load %arg10[%c0_37, %c0_38] : memref<1x128xf32, #tpu.memory_space<vmem>>, vector<1x128xf32>
    %95 = vector.broadcast %94 : vector<1x128xf32> to vector<16x128xf32>
    %96 = arith.addf %93, %95 : vector<16x128xf32>
    %cst_39 = arith.constant 5.000000e-01 : f32
    %97 = vector.broadcast %cst_39 : f32 to vector<16x128xf32>
    %98 = arith.mulf %97, %96 : vector<16x128xf32>
    %cst_40 = arith.constant 0.707106769 : f32
    %99 = vector.broadcast %cst_40 : f32 to vector<16x128xf32>
    %100 = arith.mulf %96, %99 : vector<16x128xf32>
    %101 = math.erf %100 : vector<16x128xf32>
    %cst_41 = arith.constant 1.000000e+00 : f32
    %102 = vector.broadcast %cst_41 : f32 to vector<16x128xf32>
    %103 = arith.addf %102, %101 : vector<16x128xf32>
    %104 = arith.mulf %98, %103 : vector<16x128xf32>
    %105 = arith.truncf %104 : vector<16x128xf32> to vector<16x128xbf16>
    %c0_42 = arith.constant 0 : index
    %c0_43 = arith.constant 0 : index
    %106 = vector.load %arg11[%c0_42, %c0_43] : memref<128x32xbf16, #tpu.memory_space<vmem>>, vector<128x32xbf16>
    %cst_44 = arith.constant dense<0.000000e+00> : vector<16x32xf32>
    %107 = tpu.matmul %105, %106, %cst_44 {dimension_numbers = #tpu.dot_dimension_numbers<[1], [0], [0], [1], [0, 0, 1, 1], [], []>} : vector<16x128xbf16>, vector<128x32xbf16>, vector<16x32xf32> -> vector<16x32xf32>
    %c0_45 = arith.constant 0 : index
    %c0_46 = arith.constant 0 : index
    %108 = vector.load %arg12[%c0_45, %c0_46] : memref<1x32xf32, #tpu.memory_space<vmem>>, vector<1x32xf32>
    %109 = vector.broadcast %108 : vector<1x32xf32> to vector<16x32xf32>
    %110 = arith.addf %107, %109 : vector<16x32xf32>
    %111 = arith.addf %68, %110 : vector<16x32xf32>
    %112 = vector.shape_cast %111 : vector<16x32xf32> to vector<2x8x32xf32>
    %c0_47 = arith.constant 0 : index
    %c0_48 = arith.constant 0 : index
    %c0_49 = arith.constant 0 : index
    %113 = vector.load %arg13[%c0_47, %c0_48, %c0_49] : memref<2x8x32xf32, #tpu.memory_space<vmem>>, vector<2x8x32xf32>
    tpu.vector_store %arg13[%c0_47, %c0_48, %c0_49], %112 {strides = array<i32>} : memref<2x8x32xf32, #tpu.memory_space<vmem>>, vector<2x8x32xf32>,
    return
  }
}

</mosaic_0001>

<bundles_post_ra>
// kernel: encoder_block_forward.1
= control target key start
LH: loop header
LB: loop body
LE: loop exit
PB: predicated region body
PF: predicated region fallthrough
CT: control target
= control target key end

     0   :  { %vm50_vm0 = vcmask 261120   ;;  %s1478_s0 = inlined_call_operand.vmem [shape: f32[2,8,32], index: 0, kind: input, shape index: {}]   ;;  %s1479_s1 = inlined_call_operand.vmem [shape: f32[64,32], index: 1, kind: input, shape index: {}]   ;;  %s1480_s2 = inlined_call_operand.vmem [shape: f32[1,32], index: 2, kind: input, shape index: {}]   ;;  %s1481_s3 = inlined_call_operand.vmem [shape: f32[1,32], index: 3, kind: input, shape index: {}]   ;;  %s1482_s4 = inlined_call_operand.vmem [shape: bf16[32,96], index: 4, kind: input, shape index: {}]   ;;  %s1483_s5 = inlined_call_operand.vmem [shape: bf16[32,32], index: 5, kind: input, shape index: {}]   ;;  %s1484_s6 = inlined_call_operand.vmem [shape: f32[1,32], index: 6, kind: input, shape index: {}]   ;;  %s1485_s7 = inlined_call_operand.vmem [shape: f32[1,32], index: 7, kind: input, shape index: {}]   ;;  %s1486_s8 = inlined_call_operand.vmem [shape: f32[1,32], index: 8, kind: input, shape index: {}]   ;;  %s1487_s9 = inlined_call_operand.vmem [shape: bf16[32,128], index: 9, kind: input, shape index: {}]   ;;  %s1488_s10 = inlined_call_operand.vmem [shape: f32[1,128], index: 10, kind: input, shape index: {}]   ;;  %s1489_s11 = inlined_call_operand.vmem [shape: bf16[128,32], index: 11, kind: input, shape index: {}]   ;;  %s1490_s12 = inlined_call_operand.vmem [shape: f32[1,32], index: 12, kind: input, shape index: {}]   ;;  %s1491_s13 = inlined_call_operand.hbm [shape: f32[2,8,32], index: 13, kind: output, shape index: {}]  }
   0x1   :  { %v1223_v0 = vld [vmem:[%s1478_s0] sm:$0xff]  ;;  %v1228_v1 = vld [vmem:[%s1478_s0 + $0x8] sm:$0xff] }
   0x2   :  { %v51_v2 = vsel %vm50_vm0, %v1223_v0, 0.0  ;;  %v54_v3 = vsel %vm50_vm0, %v1228_v1, 0.0 }
   0x3   :  { %52 = vadd.xlane.f32.xlu0 %v51_v2 }
   0x7   :  { %55 = vadd.xlane.f32.xlu0 %v54_v3 }
   0x8   :  { %18 = vsyncpa [#allocation3], 0  ;;  %v1085_v14 = vld [vmem:[%s1482_s4] sm:$0xff]   ;;  %v1143_v15 = vmov 0.0   ;;  %v1086_v16 = vld [vmem:[%s1482_s4 + $0x8] sm:$0xff]   ;;  %vm1144_vm1 = vmmov 0  }
   0x9   :  { %987 = vmatprep.subr.bf16.mxu0 %v1143_v15  ;;  %995 = vmatprep.subr.bf16.mxu1 %v1143_v15  ;;  %v915_v25 = vld [vmem:[%s1480_s2] ss:$0 sm:$0xff]  ;;  %v1269_v35 = vld [vmem:[%s1479_s1 + $0x8] sm:$0xff]  ;;  %v1276_v42 = vld [vmem:[%s1479_s1 + $0x10] sm:$0xff]  ;;  %s1145_s24 = smov 96   ;;  %s1146_s25 = smov 64  }
   0xa   :  { %988 = vmatpush3.bf16.msra.mxu0 %v1085_v14  ;;  %991 = vmatprep.mubr.msk.bf16.mxu0 %vm1144_vm1, %v1143_v15  ;;  %v916_v29 = vld [vmem:[%s1481_s3] ss:$0 sm:$0xff]  ;;  %v1281_v43 = vld [vmem:[%s1479_s1 + $0x18] sm:$0xff]  ;;  %v1301_v58 = vld [vmem:[%s1479_s1 + $0x28] sm:$0xff]  ;;  %vm377_vm2 = vcmask 1043456   ;;  %vm305_vm3 = vcmask 523264  }
   0xb   :  { %989 = vmatprep.subr.bf16.mxu0 %v1143_v15  ;;  %1003 = vmatprep.mubr.msk.bf16.mxu1 %vm1144_vm1, %v1143_v15  ;;  %v1264_v34 = vld [vmem:[%s1479_s1] sm:$0xff]  ;;  %vm364_vm4 = vcmask 64512   ;;  %s1147_s18 = smov [#allocation2]  }
   0xc   :  { %v1296_v57 = vld [vmem:[%s1479_s1 + $0x20] sm:$0xff] }
   0xe   :  { %990 = vmatpush3.bf16.msra.mxu0 %v1086_v16 }
   0xf   :  { %1007 = vmatprep.subr.bf16.mxu0 %v1143_v15 }
  0x90   :  { %v53_v4 = vpop.xlane.xlu0 %52 }
  0x91   :  { %v58_v5 = vmul.f32 0.03125, %v53_v4 }
  0x93   :  { %v60_v6 = vsub.f32 %v1223_v0, %v58_v5  ;;  %v1314_v5 = vld [vmem:[%s1479_s1 + $0x30] sm:$0xff] }
  0x94   :  { %v56_v7 = vpop.xlane.xlu0 %55 }
  0x95   :  { %v59_v8 = vmul.f32 0.03125, %v56_v7  ;;  %v62_v9 = vmul.f32 %v60_v6, %v60_v6 }
  0x97   :  { %v61_v10 = vsub.f32 %v1228_v1, %v59_v8  ;;  %v64_v11 = vsel %vm50_vm0, %v62_v9, 0.0 }
  0x98   :  { %65 = vadd.xlane.f32.xlu1 %v64_v11 }
  0x99   :  { %v63_v12 = vmul.f32 %v61_v10, %v61_v10 }
  0x9b   :  { %v67_v13 = vsel %vm50_vm0, %v63_v12, 0.0 }
  0x9c   :  { %68 = vadd.xlane.f32.xlu1 %v67_v13 }
 0x125   :  { %v66_v17 = vpop.xlane.xlu1 %65 }
 0x126   :  { %v70_v18 = vmul.f32 0.03125, %v66_v17 }
 0x128   :  { %v72_v19 = vadd.f32 1e-05, %v70_v18 }
 0x129   :  { %v69_v20 = vpop.xlane.xlu1 %68 }
 0x12a   :  { %1099 = vrsqrt.f32 %v72_v19  ;;  %v71_v21 = vmul.f32 0.03125, %v69_v20 }
 0x12c   :  { %v73_v22 = vadd.f32 1e-05, %v71_v21 }
 0x12e   :  { %1101 = vrsqrt.f32 %v73_v22 }
 0x134   :  { %v1100_v23 = vpop.eup %1099 }
 0x135   :  { %v76_v24 = vmul.f32 %v1100_v23, %v60_v6  ;;  %v1319_v6 = vld [vmem:[%s1479_s1 + $0x38] sm:$0xff] }
 0x137   :  { %v84_v28 = vmul.f32 %v915_v25, %v76_v24 }
 0x138   :  { %v1102_v26 = vpop.eup %1101 }
 0x139   :  { %v77_v27 = vmul.f32 %v1102_v26, %v61_v10  ;;  %v92_v31 = vadd.f32 %v916_v29, %v84_v28 }
 0x13b   :  { %v85_v30 = vmul.f32 %v915_v25, %v77_v27 }
 0x13d   :  { %v93_v32 = vadd.f32 %v916_v29, %v85_v30 }
 0x13f   :  { %v94_v33 = vpack.c.bf16 %v93_v32, %v92_v31 }
 0x141   :  { %992 = vmatmul.mubr.msk.bf16.vlgmr.msra.gmra.mrb[0].mxu0 %vm50_vm0, %v94_v33 }
 0x142   :  { %1015 = vmatprep.mubr.msk.bf16.mxu0 %vm1144_vm1, %v1143_v15 }
 0x214   :  { %v148_v36 = vpop.f32.mrb[0].mxu0 }
 0x215   :  { %v993_v37 = vpop.f32.mrb[1].mxu0  ;;  %v179_v38 = vpack.c.bf16 %v148_v36, %v148_v36  ;;  %v163_v39 = vmul.f32 %v1264_v34, %v148_v36  ;;  %v164_v40 = vmul.f32 %v1269_v35, %v148_v36  ;;  %v165_v51 = vmul.f32 %v1276_v42, %v148_v36 }
 0x216   :  { %v151_v41 = vpop.f32.mrb[2].mxu0  ;;  %v166_v52 = vmul.f32 %v1281_v43, %v148_v36  ;;  %v167_v61 = vmul.f32 %v1296_v57, %v148_v36  ;;  %v168_v62 = vmul.f32 %v1301_v58, %v148_v36  ;;  %v169_v9 = vmul.f32 %v1314_v5, %v148_v36 }
 0x217   :  { %190 = vrot.lane.b32.xlu0 %v179_v38, %s1145_s24  ;;  %v994_v44 = vpop.f32.mrb[3].mxu0  ;;  %v180_v45 = vpack.c.bf16 %v151_v41, %v151_v41  ;;  %v181_v46 = vpack.c.bf16 %v164_v40, %v163_v39  ;;  %v171_v47 = vmul.f32 %v1264_v34, %v151_v41  ;;  %v172_v48 = vmul.f32 %v1269_v35, %v151_v41 }
 0x218   :  { %v173_v54 = vmul.f32 %v1276_v42, %v151_v41  ;;  %v174_v55 = vmul.f32 %v1281_v43, %v151_v41  ;;  %v182_v56 = vpack.c.bf16 %v166_v52, %v165_v51  ;;  %v175_v2 = vmul.f32 %v1296_v57, %v151_v41 }
 0x219   :  { %248 = vrot.lane.b32.xlu1 %v180_v45, %s1145_s24  ;;  %v196_v49 = vsel %vm50_vm0, %v181_v46, 0  ;;  %v185_v50 = vpack.c.bf16 %v172_v48, %v171_v47  ;;  %v176_v3 = vmul.f32 %v1301_v58, %v151_v41  ;;  %v183_v4 = vpack.c.bf16 %v168_v62, %v167_v61 }
 0x21a   :  { %996 = vmatpush3.bf16.xpose.msra.mxu1 %v196_v49  ;;  %v186_v59 = vpack.c.bf16 %v174_v55, %v173_v54  ;;  %v199_v60 = vsel %vm50_vm0, %v182_v56, 0  ;;  %v170_v10 = vmul.f32 %v1319_v6, %v148_v36  ;;  %v177_v12 = vmul.f32 %v1314_v5, %v151_v41 }
 0x21b   :  { %v254_v53 = vsel %vm50_vm0, %v185_v50, 0  ;;  %997 = vmatprep.subr.bf16.mxu1 %v1143_v15  ;;  %v187_v7 = vpack.c.bf16 %v176_v3, %v175_v2  ;;  %v202_v8 = vsel %vm50_vm0, %v183_v4, 0  ;;  %v178_v13 = vmul.f32 %v1319_v6, %v151_v41 }
 0x21c   :  { %1008 = vmatpush3.bf16.xpose.msra.mxu0 %v254_v53  ;;  %v257_v63 = vsel %vm50_vm0, %v186_v59, 0  ;;  %v184_v14 = vpack.c.bf16 %v170_v10, %v169_v9 }
 0x21d   :  { %362 = vrot.lane.b32.xlu1 %v179_v38, %s1146_s25  ;;  %1009 = vmatprep.subr.bf16.mxu0 %v1143_v15  ;;  %v260_v11 = vsel %vm50_vm0, %v187_v7, 0  ;;  %v188_v16 = vpack.c.bf16 %v178_v13, %v177_v12 }
 0x21e   :  { %v205_v17 = vsel %vm50_vm0, %v184_v14, 0 }
 0x21f   :  { %v263_v18 = vsel %vm50_vm0, %v188_v16, 0 }
 0x221   :  { %462 = vrot.lane.b32.xlu1 %v180_v45, %s1146_s25 }
 0x222   :  { %998 = vmatpush3.bf16.xpose.msra.mxu1 %v199_v60 }
 0x223   :  { %999 = vmatprep.subr.bf16.mxu1 %v1143_v15 }
 0x224   :  { %1010 = vmatpush3.bf16.xpose.msra.mxu0 %v257_v63 }
 0x225   :  { %1011 = vmatprep.subr.bf16.mxu0 %v1143_v15 }
 0x22a   :  { %1000 = vmatpush3.bf16.xpose.msra.mxu1 %v202_v8 }
 0x22b   :  { %1001 = vmatprep.subr.bf16.mxu1 %v1143_v15 }
 0x22c   :  { %1012 = vmatpush3.bf16.xpose.msra.mxu0 %v260_v11 }
 0x22d   :  { %1013 = vmatprep.subr.bf16.mxu0 %v1143_v15 }
 0x232   :  { %1002 = vmatpush3.bf16.xpose.msra.mxu1 %v205_v17 }
 0x234   :  { %1014 = vmatpush3.bf16.xpose.msra.mxu0 %v263_v18 }
 0x289   :  { %v191_v19 = vpop.permute.xlu0 %190 }
 0x28a   :  { %1004 = vmatmul.mubr.msk.bf16.vlgmr.msra.gmra.mrb[0].mxu1 %vm50_vm0, %v191_v19 }
 0x28b   :  { %v249_v20 = vpop.permute.xlu1 %248 }
 0x28c   :  { %1016 = vmatmul.mubr.msk.bf16.vlgmr.msra.gmra.mrb[4].mxu0 %vm50_vm0, %v249_v20 }
 0x28f   :  { %v363_v21 = vpop.permute.xlu1 %362 }
 0x290   :  { %v379_v22 = vsel %vm377_vm2, %v363_v21, 0  ;;  %1075 = vmatprep.subr.msk.bf16.mxu1 %vm377_vm2, %v363_v21 }
 0x291   :  { %1020 = vmatpush3.bf16.msra.mxu1 %v379_v22 }
 0x292   :  { %1055 = vmatprep.subr.bf16.mxu1 %v1143_v15 }
 0x293   :  { %v463_v23 = vpop.permute.xlu1 %462 }
 0x294   :  { %v477_v24 = vsel %vm377_vm2, %v463_v23, 0  ;;  %1076 = vmatprep.subr.msk.bf16.mxu0 %vm377_vm2, %v463_v23 }
 0x295   :  { %1030 = vmatpush3.bf16.msra.mxu0 %v477_v24 }
 0x296   :  { %1039 = vmatprep.subr.bf16.mxu0 %v1143_v15 }
 0x35d   :  { %v241_v25 = vpop.f32.mrb[0].mxu1 }
 0x35e   :  { %v306_v26 = vsel %vm305_vm3, %v241_v25, -inf  ;;  %v1005_v27 = vpop.f32.mrb[1].mxu1 }
 0x35f   :  { %v307_v28 = vrot.slane %v306_v26, 4  ;;  %v244_v29 = vpop.f32.mrb[2].mxu1  ;;  %v299_v30 = vpop.f32.mrb[4].mxu0 }
 0x360   :  { %v313_v31 = vsel %vm305_vm3, %v299_v30, -inf  ;;  %v1006_v32 = vpop.f32.mrb[3].mxu1  ;;  %v1017_v33 = vpop.f32.mrb[5].mxu0  ;;  %v1088_v29 = vld [vmem:[%s1483_s5 + $0x8] sm:$0xff]  }
 0x361   :  { %v308_v36 = vmax.f32 %v306_v26, %v307_v28  ;;  %v314_v37 = vrot.slane %v313_v31, 4  ;;  %v302_v38 = vpop.f32.mrb[6].mxu0  ;;  %v1087_v28 = vld [vmem:[%s1483_s5] sm:$0xff]  }
 0x362   :  { %v1018_v39 = vpop.f32.mrb[7].mxu0 }
 0x363   :  { %v309_v40 = vrot.slane %v308_v36, 2  ;;  %v315_v41 = vmax.f32 %v313_v31, %v314_v37 }
 0x365   :  { %v310_v44 = vmax.f32 %v308_v36, %v309_v40  ;;  %v316_v45 = vrot.slane %v315_v41, 2 }
 0x367   :  { %v311_v46 = vrot.slane %v310_v44, 1  ;;  %v317_v47 = vmax.f32 %v315_v41, %v316_v45 }
 0x369   :  { %v312_v48 = vmax.f32 %v310_v44, %v311_v46  ;;  %v318_v49 = vrot.slane %v317_v47, 1 }
 0x36b   :  { %v320_v50 = vsub.f32 %v241_v25, %v312_v48  ;;  %v319_v51 = vmax.f32 %v317_v47, %v318_v49 }
 0x36d   :  { %v322_v52 = vmul.f32 1.442695, %v320_v50  ;;  %v321_v53 = vsub.f32 %v299_v30, %v319_v51 }
 0x36f   :  { %1103 = vpow2.f32 %v322_v52  ;;  %v324_v54 = vmul.f32 1.442695, %v321_v53 }
 0x371   :  { %1105 = vpow2.f32 %v324_v54 }
 0x379   :  { %v1104_v55 = vpop.eup %1103 }
 0x37a   :  { %v326_v56 = vsel %vm305_vm3, %v1104_v55, 0.0 }
 0x37b   :  { %v1106_v59 = vpop.eup %1105  ;;  %v327_v60 = vrot.slane %v326_v56, 4 }
 0x37c   :  { %v333_v61 = vsel %vm305_vm3, %v1106_v59, 0.0 }
 0x37d   :  { %v328_v62 = vadd.f32 %v327_v60, %v326_v56  ;;  %v334_v63 = vrot.slane %v333_v61, 4 }
 0x37f   :  { %v329_v2 = vrot.slane %v328_v62, 2  ;;  %v335_v3 = vadd.f32 %v334_v63, %v333_v61 }
 0x381   :  { %v330_v4 = vadd.f32 %v329_v2, %v328_v62  ;;  %v336_v7 = vrot.slane %v335_v3, 2 }
 0x383   :  { %v331_v8 = vrot.slane %v330_v4, 1  ;;  %v337_v9 = vadd.f32 %v336_v7, %v335_v3 }
 0x385   :  { %v332_v10 = vadd.f32 %v331_v8, %v330_v4  ;;  %v338_v11 = vrot.slane %v337_v9, 1 }
 0x387   :  { %1107 = vrcp.f32 %v332_v10  ;;  %v339_v12 = vadd.f32 %v338_v11, %v337_v9 }
 0x389   :  { %1109 = vrcp.f32 %v339_v12 }
 0x391   :  { %v1108_v13 = vpop.eup %1107 }
 0x392   :  { %v342_v14 = vmul.f32 %v1108_v13, %v1104_v55 }
 0x393   :  { %v1110_v16 = vpop.eup %1109 }
 0x394   :  { %v344_v17 = vpack.c.bf16 %v342_v14, %v342_v14  ;;  %v343_v18 = vmul.f32 %v1110_v16, %v1106_v59 }
 0x396   :  { %346 = vxpose.xlu0.c.b16.start.end [1/1] (short) (narrow) %v344_v17, 64  ;;  %v345_v19 = vpack.c.bf16 %v343_v18, %v343_v18 }
 0x398   :  { %446 = vxpose.xlu1.c.b16.start.end [1/1] (short) (narrow) %v345_v19, 64 }
 0x3fc   :  { %v354_v20 = vpop.trf.xlu0 }
 0x3fd   :  { %1021 = vmatprep.mubr.msk.bf16.mxu1 %vm364_vm4, %v354_v20 }
 0x3fe   :  { %v454_v21 = vpop.trf.xlu1 }
 0x3ff   :  { %1031 = vmatprep.mubr.msk.bf16.mxu0 %vm364_vm4, %v454_v21 }
 0x400   :  { %v355_v22 = vpop.trf.xlu0 }
 0x401   :  { %1022 = vmatmul.mubr.msk.bf16.vlgmr.msra.gmra.mrb[4].mxu1 %vm364_vm4, %v355_v22 }
 0x402   :  { %v455_v23 = vpop.trf.xlu1 }
 0x403   :  { %1032 = vmatmul.mubr.msk.bf16.vlgmr.msra.gmra.mrb[8].mxu0 %vm364_vm4, %v455_v23 }
 0x404   :  { %v356_v24 = vpop.trf.xlu0  ;;  %1040 = vmatpush3.bf16.msra.mxu0 %v1087_v28 }
 0x405   :  { %1025 = vmatprep.mubr.msk.bf16.mxu1 %vm364_vm4, %v356_v24  ;;  %1041 = vmatprep.subr.bf16.mxu0 %v1143_v15 }
 0x406   :  { %v456_v25 = vpop.trf.xlu1 }
 0x407   :  { %1035 = vmatprep.mubr.msk.bf16.mxu0 %vm364_vm4, %v456_v25 }
 0x408   :  { %v357_v26 = vpop.trf.xlu0  ;;  %1042 = vmatpush3.bf16.msra.mxu0 %v1088_v29 }
 0x409   :  { %1026 = vmatmul.mubr.msk.bf16.gmra.mrb[8].mxu1 %vm364_vm4, %v357_v26  ;;  %1047 = vmatprep.subr.bf16.mxu0 %v1143_v15 }
 0x40a   :  { %v457_v27 = vpop.trf.xlu1  ;;  %1071 = vmatprep.mubr.msk.bf16.mxu1 %vm1144_vm1, %v1143_v15 }
 0x40b   :  { %1036 = vmatmul.mubr.msk.bf16.gmra.mrb[12].mxu0 %vm364_vm4, %v457_v27 }
 0x40c   :  { %1043 = vmatprep.mubr.msk.bf16.mxu0 %vm1144_vm1, %v1143_v15 }
 0x4d4   :  { %v1023_v30 = vpop.f32.mrb[4].mxu1 }
 0x4d5   :  { %v415_v31 = vpop.f32.mrb[5].mxu1  ;;  %v546_v39 = vmul.f32 %v1023_v30, %v1276_v42 }
 0x4d6   :  { %v544_v32 = vmul.f32 %v415_v31, %v1264_v34  ;;  %v1024_v33 = vpop.f32.mrb[6].mxu1  ;;  %v1033_v36 = vpop.f32.mrb[8].mxu0 }
 0x4d7   :  { %v418_v37 = vpop.f32.mrb[7].mxu1  ;;  %v513_v38 = vpop.f32.mrb[9].mxu0  ;;  %v547_v47 = vmul.f32 %v1024_v33, %v1281_v43  ;;  %v554_v48 = vmul.f32 %v1033_v36, %v1276_v42  ;;  %v563_v53 = vsel %vm50_vm0, %v546_v39, 0.0 }
 0x4d8   :  { %v560_v40 = vsel %vm50_vm0, %v544_v32, 0.0  ;;  %v545_v41 = vmul.f32 %v418_v37, %v1269_v35  ;;  %v552_v44 = vmul.f32 %v513_v38, %v1264_v34  ;;  %v1034_v45 = vpop.f32.mrb[10].mxu0 }
 0x4d9   :  { %v516_v46 = vpop.f32.mrb[11].mxu0  ;;  %v555_v52 = vmul.f32 %v1034_v45, %v1281_v43  ;;  %v565_v61 = vsel %vm50_vm0, %v547_v47, 0.0  ;;  %v578_v42 = vsel %vm50_vm0, %v554_v48, 0.0 }
 0x4da   :  { %v561_v49 = vsel %vm50_vm0, %v545_v41, 0.0  ;;  %v553_v50 = vmul.f32 %v516_v46, %v1269_v35  ;;  %v575_v54 = vsel %vm50_vm0, %v552_v44, 0.0 }
 0x4db   :  { %v562_v51 = vadd.f32 %v561_v49, %v560_v40  ;;  %v580_v43 = vsel %vm50_vm0, %v555_v52, 0.0 }
 0x4dc   :  { %v576_v55 = vsel %vm50_vm0, %v553_v50, 0.0  ;;  %v1027_v34 = vpop.f32.mrb[8].mxu1 }
 0x4dd   :  { %v564_v56 = vadd.f32 %v563_v53, %v562_v51  ;;  %v577_v59 = vadd.f32 %v576_v55, %v575_v54  ;;  %v431_v60 = vpop.f32.mrb[9].mxu1  ;;  %v550_v8 = vmul.f32 %v1027_v34, %v1314_v5  ;;  %v1089_v55 = vld [vmem:[%s1487_s9] sm:$0xff]   ;;  %v1090_v34 = vld [vmem:[%s1487_s9 + $0x8] sm:$0xff]  }
 0x4de   :  { %v548_v62 = vmul.f32 %v431_v60, %v1296_v57  ;;  %v1028_v35 = vpop.f32.mrb[10].mxu1  ;;  %v1037_v63 = vpop.f32.mrb[12].mxu0 }
 0x4df   :  { %v579_v2 = vadd.f32 %v578_v42, %v577_v59  ;;  %v566_v3 = vadd.f32 %v565_v61, %v564_v56  ;;  %v434_v4 = vpop.f32.mrb[11].mxu1  ;;  %v529_v7 = vpop.f32.mrb[13].mxu0  ;;  %v551_v14 = vmul.f32 %v1028_v35, %v1319_v6  ;;  %v558_v18 = vmul.f32 %v1037_v63, %v1314_v5  ;;  %v1091_v56 = vld [vmem:[%s1489_s11] sm:$0xff]   ;;  %v1092_v59 = vld [vmem:[%s1489_s11 + $0x8] sm:$0xff]  }
 0x4e0   :  { %v567_v9 = vsel %vm50_vm0, %v548_v62, 0.0  ;;  %v549_v10 = vmul.f32 %v434_v4, %v1301_v58  ;;  %v556_v11 = vmul.f32 %v529_v7, %v1296_v57  ;;  %v1038_v12 = vpop.f32.mrb[14].mxu0  ;;  %v571_v24 = vsel %vm50_vm0, %v550_v8, 0.0  ;;  %1056 = vmatpush3.bf16.msra.mxu1 %v1091_v56 }
 0x4e1   :  { %v568_v13 = vadd.f32 %v567_v9, %v566_v3  ;;  %v581_v16 = vadd.f32 %v580_v43, %v579_v2  ;;  %v532_v17 = vpop.f32.mrb[15].mxu0  ;;  %v559_v57 = vmul.f32 %v1038_v12, %v1319_v6  ;;  %v573_v28 = vsel %vm50_vm0, %v551_v14, 0.0  ;;  %v930_v6 = vld [vmem:[%s1484_s6] ss:$0 sm:$0xff]  ;;  %1057 = vmatprep.subr.bf16.mxu1 %v1143_v15  ;;  %v1093_v14 = vld [vmem:[%s1489_s11 + $0x10] sm:$0xff]   ;;  %s904_s6 = sshll.u32 %s1147_s18, 4  ;;  %s905_s6 = int_to_ptr.vmem [resolvable:$true] %s904_s6 }
 0x4e2   :  { %v569_v19 = vsel %vm50_vm0, %v549_v10, 0.0  ;;  %v582_v20 = vsel %vm50_vm0, %v556_v11, 0.0  ;;  %v557_v21 = vmul.f32 %v532_v17, %v1301_v58  ;;  %v586_v5 = vsel %vm50_vm0, %v558_v18, 0.0  ;;  %v934_v3 = vld [vmem:[%s1485_s7] ss:$0 sm:$0xff]  ;;  %v1096_v18 = vld [vmem:[%s1489_s11 + $0x28] sm:$0xff]   ;;  %p1124_p1 = scmp.lt.s32.totalorder %s905_s6, %s905_s6 }
 0x4e3   :  { %v570_v22 = vadd.f32 %v569_v19, %v568_v13  ;;  %v583_v23 = vadd.f32 %v582_v20, %v581_v16  ;;  %v588_v31 = vsel %vm50_vm0, %v559_v57, 0.0  ;;  %v935_v9 = vld [vmem:[%s1486_s8] ss:$0 sm:$0xff]  ;;  %v1094_v16 = vld [vmem:[%s1489_s11 + $0x18] sm:$0xff]   ;;  %v1097_v19 = vld [vmem:[%s1489_s11 + $0x30] sm:$0xff]   ;;  %s1119_s19 = scalar_lea.vmem %s905_s6, 256 }
 0x4e4   :  { %v584_v25 = vsel %vm50_vm0, %v557_v21, 0.0  ;;  %1058 = vmatpush3.bf16.msra.mxu1 %v1092_v59  ;;  %v1095_v17 = vld [vmem:[%s1489_s11 + $0x20] sm:$0xff]   ;;  %v1098_v20 = vld [vmem:[%s1489_s11 + $0x38] sm:$0xff]   ;;  %p1120_p0 = scmp.ne.s32.totalorder %s905_s6, %s1119_s19  ;;  %p1125_p2 = scmp.lt.s32.totalorder %s1119_s19, %s1119_s19 }
 0x4e5   :  { %v572_v26 = vadd.f32 %v571_v24, %v570_v22  ;;  %v585_v27 = vadd.f32 %v584_v25, %v583_v23  ;;  %1059 = vmatprep.subr.bf16.mxu1 %v1143_v15  ;;  %v936_v21 = vld [vmem:[%s1488_s10] ss:$0 sm:$0xff] }
 0x4e6   :  { %p1126_p3 = por %p1125_p2, %p1124_p1 }
 0x4e7   :  { %v574_v29 = vadd.f32 %v573_v28, %v572_v26  ;;  %v587_v30 = vadd.f32 %v586_v5, %v585_v27 }
 0x4e8   :  { %1060 = vmatpush3.bf16.msra.mxu1 %v1093_v14  ;;  %p1127_p4 = pnand %p1126_p3, %p1120_p0 }
 0x4e9   :  { %v589_v32 = vadd.f32 %v588_v31, %v587_v30  ;;  %1061 = vmatprep.subr.bf16.mxu1 %v1143_v15 }
 0x4eb   :  { %v590_v58 = vpack.c.bf16 %v589_v32, %v574_v29 }
 0x4ec   :  { %1062 = vmatpush3.bf16.msra.mxu1 %v1094_v16 }
 0x4ed   :  { %1044 = vmatmul.mubr.msk.bf16.vlgmr.msra.gmra.mrb[16].mxu0 %vm50_vm0, %v590_v58  ;;  %1063 = vmatprep.subr.bf16.mxu1 %v1143_v15 }
 0x4ee   :  { %1051 = vmatprep.mubr.msk.bf16.mxu0 %vm1144_vm1, %v1143_v15  ;;  %1048 = vmatpush3.bf16.msra.mxu0 %v1089_v55 }
 0x4ef   :  { %1049 = vmatprep.subr.bf16.mxu0 %v1143_v15 }
 0x4f0   :  { %1064 = vmatpush3.bf16.msra.mxu1 %v1095_v17 }
 0x4f1   :  { %1065 = vmatprep.subr.bf16.mxu1 %v1143_v15 }
 0x4f2   :  { %1050 = vmatpush3.bf16.msra.mxu0 %v1090_v34 }
 0x4f4   :  { %1066 = vmatpush3.bf16.msra.mxu1 %v1096_v18 }
 0x4f5   :  { %1067 = vmatprep.subr.bf16.mxu1 %v1143_v15 }
 0x4f8   :  { %1068 = vmatpush3.bf16.msra.mxu1 %v1097_v19 }
 0x4f9   :  { %1069 = vmatprep.subr.bf16.mxu1 %v1143_v15 }
 0x4fc   :  { %1070 = vmatpush3.bf16.msra.mxu1 %v1098_v20 }
 0x5c0   :  { %v651_v33 = vpop.f32.mrb[16].mxu0 }
 0x5c1   :  { %v652_v36 = vadd.f32 %v930_v6, %v651_v33  ;;  %v1045_v37 = vpop.f32.mrb[17].mxu0 }
 0x5c2   :  { %v654_v38 = vpop.f32.mrb[18].mxu0 }
 0x5c3   :  { %v1398_v39 = vadd.f32 %v652_v36, %v1223_v0  ;;  %v655_v40 = vadd.f32 %v930_v6, %v654_v38  ;;  %v1046_v41 = vpop.f32.mrb[19].mxu0  ;;  %v940_v36 = vld [vmem:[%s1490_s12] ss:$0 sm:$0xff] }
 0x5c5   :  { %v1401_v44 = vadd.f32 %v655_v40, %v1228_v1  ;;  %v662_v45 = vsel %vm50_vm0, %v1398_v39, 0.0 }
 0x5c6   :  { %663 = vadd.xlane.f32.xlu0 %v662_v45 }
 0x5c7   :  { %v665_v46 = vsel %vm50_vm0, %v1401_v44, 0.0 }
 0x5c8   :  { %666 = vadd.xlane.f32.xlu1 %v665_v46 }
 0x653   :  { %v664_v47 = vpop.xlane.xlu0 %663 }
 0x654   :  { %v668_v48 = vmul.f32 0.03125, %v664_v47 }
 0x655   :  { %v667_v49 = vpop.xlane.xlu1 %666 }
 0x656   :  { %v670_v50 = vsub.f32 %v1398_v39, %v668_v48  ;;  %v669_v0 = vmul.f32 0.03125, %v667_v49 }
 0x658   :  { %v671_v51 = vsub.f32 %v1401_v44, %v669_v0  ;;  %v672_v52 = vmul.f32 %v670_v50, %v670_v50 }
 0x65a   :  { %v674_v1 = vsel %vm50_vm0, %v672_v52, 0.0  ;;  %v673_v53 = vmul.f32 %v671_v51, %v671_v51 }
 0x65b   :  { %675 = vadd.xlane.f32.xlu0 %v674_v1 }
 0x65c   :  { %v677_v54 = vsel %vm50_vm0, %v673_v53, 0.0 }
 0x65f   :  { %678 = vadd.xlane.f32.xlu0 %v677_v54 }
 0x6e8   :  { %v676_v60 = vpop.xlane.xlu0 %675 }
 0x6e9   :  { %v680_v61 = vmul.f32 0.03125, %v676_v60 }
 0x6eb   :  { %v682_v42 = vadd.f32 1e-05, %v680_v61 }
 0x6ec   :  { %v679_v62 = vpop.xlane.xlu0 %678 }
 0x6ed   :  { %1111 = vrsqrt.f32 %v682_v42  ;;  %v681_v35 = vmul.f32 0.03125, %v679_v62 }
 0x6ef   :  { %v683_v63 = vadd.f32 1e-05, %v681_v35 }
 0x6f1   :  { %1113 = vrsqrt.f32 %v683_v63 }
 0x6f7   :  { %v1112_v43 = vpop.eup %1111 }
 0x6f8   :  { %v686_v2 = vmul.f32 %v1112_v43, %v670_v50 }
 0x6fa   :  { %v694_v7 = vmul.f32 %v934_v3, %v686_v2 }
 0x6fb   :  { %v1114_v4 = vpop.eup %1113 }
 0x6fc   :  { %v687_v8 = vmul.f32 %v1114_v4, %v671_v51  ;;  %v702_v11 = vadd.f32 %v935_v9, %v694_v7 }
 0x6fe   :  { %v695_v10 = vmul.f32 %v934_v3, %v687_v8 }
 0x700   :  { %v703_v12 = vadd.f32 %v935_v9, %v695_v10 }
 0x702   :  { %v704_v13 = vpack.c.bf16 %v703_v12, %v702_v11 }
 0x704   :  { %1052 = vmatmul.mubr.msk.bf16.vlgmr.msra.gmra.mrb[20].mxu0 %vm50_vm0, %v704_v13 }
 0x7d7   :  { %v765_v22 = vpop.f32.mrb[20].mxu0 }
 0x7d8   :  { %v766_v23 = vadd.f32 %v936_v21, %v765_v22  ;;  %v1053_v24 = vpop.f32.mrb[21].mxu0 }
 0x7d9   :  { %v768_v57 = vpop.f32.mrb[22].mxu0 }
 0x7da   :  { %v774_v25 = vmul.f32 0.70710677, %v766_v23  ;;  %v769_v26 = vadd.f32 %v936_v21, %v768_v57  ;;  %v1054_v27 = vpop.f32.mrb[23].mxu0  ;;  %v772_v31 = vmul.f32 0.5, %v766_v23 }
 0x7dc   :  { %1115 = verf.f32 %v774_v25  ;;  %v775_v28 = vmul.f32 0.70710677, %v769_v26  ;;  %v773_v15 = vmul.f32 0.5, %v769_v26 }
 0x7de   :  { %1117 = verf.f32 %v775_v28 }
 0x7e6   :  { %v1116_v5 = vpop.eup %1115 }
 0x7e7   :  { %v778_v29 = vadd.f32 1.0, %v1116_v5 }
 0x7e8   :  { %v1118_v30 = vpop.eup %1117 }
 0x7e9   :  { %v779_v32 = vadd.f32 1.0, %v1118_v30  ;;  %v780_v58 = vmul.f32 %v778_v29, %v772_v31 }
 0x7eb   :  { %v781_v6 = vmul.f32 %v779_v32, %v773_v15 }
 0x7ed   :  { %v782_v33 = vpack.c.bf16 %v781_v6, %v780_v58 }
 0x7ef   :  { %1072 = vmatmul.mubr.bf16.vlgmr.msra.gmra.mrb[12].mxu1 %v782_v33 }
 0x8c2   :  { %v888_v37 = vpop.f32.mrb[12].mxu1 }
 0x8c3   :  { %v889_v38 = vadd.f32 %v940_v36, %v888_v37  ;;  %v1073_v40 = vpop.f32.mrb[13].mxu1 }
 0x8c4   :  { %v891_v41 = vpop.f32.mrb[14].mxu1 }
 0x8c5   :  { %v895_v45 = vadd.f32 %v889_v38, %v1398_v39  ;;  %v892_v46 = vadd.f32 %v940_v36, %v891_v41  ;;  %v1074_v47 = vpop.f32.mrb[15].mxu1 }
 0x8c7   :  { %897 = vst.msk [vmem:[#allocation2] sm:$0xff] %vm50_vm0, %v895_v45  ;;  %v896_v48 = vadd.f32 %v892_v46, %v1401_v44 }
 0x8c9   :  { %898 = vst.msk [vmem:[#allocation2 + $0x8] sm:$0xff] %vm50_vm0, %v896_v48 }
 0x8ca   :  { %1130 = shalt.err (!%p1127_p4)
}
 0x8cb   :  { %s1131_s20 = scalar_lea.hbm %s1491_s13, 256 }
 0x8cc   :  { %p1132_p5 = scmp.ne.s32.totalorder %s1491_s13, %s1131_s20  ;;  %p1135_p6 = scmp.lt.u32.totalorder %s1131_s20, %s1491_s13 }
 0x8ce   :  { %p1137_p7 = pnand %p1135_p6, %p1132_p5 }
 0x8d0   :  { %1140 = shalt.err (!%p1137_p7)
}
 0x8d1   :  { %s1148_s9 = smov 128   ;;  %s1149_s24 = smov 8  }
 0x8d2   :  { %910 = dma.vmem_to_hbm [thread:$0]  %s905_s6, 256, %s1491_s13, [#allocation3], %s1148_s9, %s1148_s9, %s1149_s24  }
 0x8d3   :  { %1141 = dma.done.wait [#allocation3], 256  }
 0x8d4   :  { %1142 = vsyncadd [#allocation3], 4294967040 }
 0x8d5   :  { %914 = vsyncpa [#allocation3], 1 }

</bundles_post_ra>
